<compile_context>
chip_gen: v7x
topology: tpu7x:2x2x1
jax: 0.10.0
libtpu: 0.0.40
codegen_flags: <defaults>
</compile_context>

<pallas_src>
import functools

import jax
import jax.numpy as jnp
from jax.experimental import pallas as pl
from jax.experimental.pallas import tpu as pltpu


def _conv1d_relu_kernel(x_ref, w_ref, b_ref, o_ref, xpad_ref, *, ksize, pad):
    """One batch-tile: fused pad + im2col + single MXU matmul + bias + ReLU.

    x_ref   : (bt, L, C)            channels-last activations (unpadded)
    w_ref   : (ksize*C, Fpad)       flattened conv weights, lane-padded filters
    b_ref   : (1, Fpad)             lane-padded bias
    o_ref   : (bt*L, Fpad)          output rows (batch folded into M), lane-dense
    xpad_ref: (bt, L+2*pad, C)      VMEM scratch holding the zero-padded sequence
    """
    bt, L, C = x_ref.shape

    # Fused sequence zero-padding (replaces the wrapper-side jnp.pad HBM pass).
    if pad > 0:
        xpad_ref[:, 0:pad, :] = jnp.zeros((bt, pad, C), jnp.float32)
        xpad_ref[:, L + pad:L + 2 * pad, :] = jnp.zeros((bt, pad, C), jnp.float32)
    xpad_ref[:, pad:pad + L, :] = x_ref[...]
    xp = xpad_ref[...]                                          # (bt, L+2p, C)

    # im2col: concatenate the ksize shifted windows along the lane axis and fold
    # batch into M -> a single (bt*L, ksize*C) @ (ksize*C, Fpad) MXU matmul.
    lhs = jnp.concatenate([xp[:, k:k + L, :] for k in range(ksize)], axis=-1)
    lhs = lhs.reshape(bt * L, ksize * C)
    acc = jnp.dot(lhs, w_ref[...], preferred_element_type=jnp.float32)
    acc = acc + b_ref[...]                                      # bias broadcast
    o_ref[...] = jnp.maximum(acc, 0.0)                          # ReLU, unmasked 128-lane stores


def _pick_batch_tile(batch, seq_len, target_rows=256):
    """Largest divisor of `batch` whose tile keeps bt*L in the ~256-512 MXU-row range
    (and comfortably inside default scoped VMEM on v5e/v6e/v7x)."""
    best = 1
    for d in range(1, batch + 1):
        if batch % d == 0 and d * seq_len <= target_rows:
            best = d
    return best


def cnn_forward(embeddings, mask, weight, bias, *, filter_size=3):
    """Pallas forward of CNN.forward (eval mode).

    embeddings: (B, C_in, L) float32   (PyTorch NCL layout)
    mask:       (B, L) int32           (only feeds seq_lengths, which the module discards)
    weight:     (n_filters, C_in, filter_size)    nn.Conv1d weight layout
    bias:       (n_filters,)
    returns     (B, L, n_filters) float32  ==  ReLU(conv1(x)).permute(0, 2, 1)
    """
    B, C_in, L = embeddings.shape
    F = weight.shape[0]
    assert filter_size % 2 == 1, (
        "even filter_size changes the PyTorch Conv1d output length; only odd supported")
    pad = filter_size // 2
    del mask  # seq_lengths = mask.sum(1) is computed but unused in the PyTorch forward.

    # Dropout2d layers are identity in eval mode.
    # TODO(synk): training-mode channel dropout (Dropout2d) not implemented.

    # Lane-padded filter count so output stores are unmasked full-lane vst's.
    f_pad = max(128, ((F + 127) // 128) * 128)

    # Wrapper glue: NCL -> channels-last so C_in is the MXU contraction (lane) axis.
    # The sequence zero-padding is fused into the kernel (VMEM scratch), so there is
    # no separate jnp.pad HBM pass.
    # TODO(synk): the NCL->NLC transpose is still one XLA pass; produce channels-last
    # embeddings upstream to remove it entirely.
    x_cl = jnp.transpose(embeddings, (0, 2, 1)).astype(jnp.float32)       # (B, L, C_in)

    # Conv weight -> (ksize*C_in, f_pad): row k*C_in + c multiplies tap k, channel c.
    # Zero-padded filter columns cost no extra MXU pushes (RHS already spans one lane group).
    w_flat = jnp.transpose(weight, (2, 1, 0)).astype(jnp.float32).reshape(
        filter_size * C_in, F)
    w_flat = jnp.pad(w_flat, ((0, 0), (0, f_pad - F)))
    b_row = jnp.pad(bias.astype(jnp.float32), (0, f_pad - F)).reshape(1, f_pad)

    # Fold batch into the matmul M axis; grid only over batch-tiles.
    bt = _pick_batch_tile(B, L)
    grid = (B // bt,)

    kernel = functools.partial(_conv1d_relu_kernel, ksize=filter_size, pad=pad)

    out = pl.pallas_call(
        kernel,
        out_shape=jax.ShapeDtypeStruct((B * L, f_pad), jnp.float32),
        grid=grid,
        in_specs=[
            pl.BlockSpec((bt, L, C_in), lambda i: (i, 0, 0)),
            pl.BlockSpec((filter_size * C_in, f_pad), lambda i: (0, 0)),
            pl.BlockSpec((1, f_pad), lambda i: (0, 0)),
        ],
        out_specs=pl.BlockSpec((bt * L, f_pad), lambda i: (i, 0)),
        scratch_shapes=[pltpu.VMEM((bt, L + 2 * pad, C_in), jnp.float32)],
        compiler_params=pltpu.CompilerParams(
            dimension_semantics=("parallel",)),
    )(x_cl, w_flat, b_row)

    # Metadata reshape + slice off the lane-padding filter columns.
    return out.reshape(B, L, f_pad)[:, :, :F]


def _reference(embeddings, weight, bias, filter_size=3):
    # Pure-JAX reference of ReLU(Conv1d(x)).permute(0, 2, 1)
    pad = filter_size // 2
    B, C_in, L = embeddings.shape
    x_pad = jnp.pad(embeddings, ((0, 0), (0, 0), (pad, pad)))
    out = jnp.zeros((B, weight.shape[0], L), jnp.float32)
    for k in range(filter_size):
        out += jnp.einsum('bcl,fc->bfl', x_pad[:, :, k:k + L], weight[:, :, k])
    out = jnp.maximum(out + bias[None, :, None], 0.0)
    return jnp.transpose(out, (0, 2, 1))


if __name__ == "__main__":
    # Small, deterministic shapes consistent with the module's forward signature.
    B, C_in, L = 2, 128, 16          # (batch, embeddings_dim, seq_len)
    n_filters, filter_size = 32, 3

    key = jax.random.PRNGKey(0)
    k1, k2, k3 = jax.random.split(key, 3)
    embeddings = jax.random.normal(k1, (B, C_in, L), dtype=jnp.float32)
    mask = jnp.ones((B, L), dtype=jnp.int32)
    # Deterministic Conv1d parameter init (uniform, same shapes as nn.Conv1d).
    bound = 1.0 / float(jnp.sqrt(C_in * filter_size))
    weight = jax.random.uniform(k2, (n_filters, C_in, filter_size),
                                minval=-bound, maxval=bound, dtype=jnp.float32)
    bias = jax.random.uniform(k3, (n_filters,),
                              minval=-bound, maxval=bound, dtype=jnp.float32)

    out = cnn_forward(embeddings, mask, weight, bias, filter_size=filter_size)
    out = jax.block_until_ready(out)

    ref = _reference(embeddings, weight, bias, filter_size)
    assert out.shape == (B, L, n_filters), out.shape
    assert jnp.allclose(out, ref, atol=1e-4, rtol=1e-4), "mismatch vs reference"
    print("KERNEL_OK")
</pallas_src>

<mosaic_0001>
module attributes {stable_mosaic.version = 11 : i64} {
  func.func @_conv1d_relu_kernel(%arg0: i32, %arg1: memref<2x16x128xf32, #tpu.memory_space<vmem>>, %arg2: memref<384x128xf32, #tpu.memory_space<vmem>>, %arg3: memref<1x128xf32, #tpu.memory_space<vmem>>, %arg4: memref<32x128xf32, #tpu.memory_space<vmem>>, %arg5: memref<2x18x128xf32, #tpu.memory_space<vmem>>) attributes {dimension_semantics = [#tpu.dimension_semantics<parallel>], iteration_bounds = array<i64: 1>, scalar_prefetch = 0 : i64, scratch_operands = 1 : i64, tpu.core_type = #tpu.core_type<tc>, window_params = [{transform_indices = @transform_0, window_bounds = array<i64: 2, 16, 128>}, {pipeline_mode = #tpu.pipeline_mode<synchronous>, transform_indices = @transform_1, window_bounds = array<i64: 384, 128>}, {pipeline_mode = #tpu.pipeline_mode<synchronous>, transform_indices = @transform_2, window_bounds = array<i64: 1, 128>}, {transform_indices = @transform_3, window_bounds = array<i64: 32, 128>}]} {
    %cst = arith.constant 0.000000e+00 : f32
    %0 = vector.broadcast %cst : f32 to vector<2x1x128xf32>
    %c0 = arith.constant 0 : index
    %c0_0 = arith.constant 0 : index
    %c0_1 = arith.constant 0 : index
    %1 = vector.load %arg5[%c0, %c0_0, %c0_1] : memref<2x18x128xf32, #tpu.memory_space<vmem>>, vector<2x1x128xf32>
    tpu.vector_store %arg5[%c0, %c0_0, %c0_1], %0 {strides = array<i32>} : memref<2x18x128xf32, #tpu.memory_space<vmem>>, vector<2x1x128xf32>,
    %cst_2 = arith.constant 0.000000e+00 : f32
    %2 = vector.broadcast %cst_2 : f32 to vector<2x1x128xf32>
    %c0_3 = arith.constant 0 : index
    %c17 = arith.constant 17 : index
    %c0_4 = arith.constant 0 : index
    %3 = vector.load %arg5[%c0_3, %c17, %c0_4] : memref<2x18x128xf32, #tpu.memory_space<vmem>>, vector<2x1x128xf32>
    tpu.vector_store %arg5[%c0_3, %c17, %c0_4], %2 {strides = array<i32>} : memref<2x18x128xf32, #tpu.memory_space<vmem>>, vector<2x1x128xf32>,
    %c0_5 = arith.constant 0 : index
    %c0_6 = arith.constant 0 : index
    %c0_7 = arith.constant 0 : index
    %4 = vector.load %arg1[%c0_5, %c0_6, %c0_7] : memref<2x16x128xf32, #tpu.memory_space<vmem>>, vector<2x16x128xf32>
    %c0_8 = arith.constant 0 : index
    %c1 = arith.constant 1 : index
    %c0_9 = arith.constant 0 : index
    %5 = vector.load %arg5[%c0_8, %c1, %c0_9] : memref<2x18x128xf32, #tpu.memory_space<vmem>>, vector<2x16x128xf32>
    tpu.vector_store %arg5[%c0_8, %c1, %c0_9], %4 {strides = array<i32>} : memref<2x18x128xf32, #tpu.memory_space<vmem>>, vector<2x16x128xf32>,
    %c0_10 = arith.constant 0 : index
    %c0_11 = arith.constant 0 : index
    %c0_12 = arith.constant 0 : index
    %6 = vector.load %arg5[%c0_10, %c0_11, %c0_12] : memref<2x18x128xf32, #tpu.memory_space<vmem>>, vector<2x18x128xf32>
    %7 = vector.extract_strided_slice %6 {offsets = [0, 0, 0], sizes = [2, 16, 128], strides = [1, 1, 1]} : vector<2x18x128xf32> to vector<2x16x128xf32>
    %8 = vector.extract_strided_slice %6 {offsets = [0, 1, 0], sizes = [2, 16, 128], strides = [1, 1, 1]} : vector<2x18x128xf32> to vector<2x16x128xf32>
    %9 = vector.extract_strided_slice %6 {offsets = [0, 2, 0], sizes = [2, 16, 128], strides = [1, 1, 1]} : vector<2x18x128xf32> to vector<2x16x128xf32>
    %10 = tpu.concatenate %7, %8, %9 in 2 : vector<2x16x128xf32>, vector<2x16x128xf32>, vector<2x16x128xf32> -> vector<2x16x384xf32>
    %11 = vector.shape_cast %10 : vector<2x16x384xf32> to vector<32x384xf32>
    %c0_13 = arith.constant 0 : index
    %c0_14 = arith.constant 0 : index
    %12 = vector.load %arg2[%c0_13, %c0_14] : memref<384x128xf32, #tpu.memory_space<vmem>>, vector<384x128xf32>
    %cst_15 = arith.constant dense<0.000000e+00> : vector<32x128xf32>
    %13 = tpu.matmul %11, %12, %cst_15 {dimension_numbers = #tpu.dot_dimension_numbers<[1], [0], [0], [1], [0, 0, 1, 1], [], []>} : vector<32x384xf32>, vector<384x128xf32>, vector<32x128xf32> -> vector<32x128xf32>
    %c0_16 = arith.constant 0 : index
    %c0_17 = arith.constant 0 : index
    %14 = vector.load %arg3[%c0_16, %c0_17] : memref<1x128xf32, #tpu.memory_space<vmem>>, vector<1x128xf32>
    %15 = vector.broadcast %14 : vector<1x128xf32> to vector<32x128xf32>
    %16 = arith.addf %13, %15 : vector<32x128xf32>
    %cst_18 = arith.constant 0.000000e+00 : f32
    %17 = vector.broadcast %cst_18 : f32 to vector<32x128xf32>
    %18 = arith.maximumf %16, %17 : vector<32x128xf32>
    %c0_19 = arith.constant 0 : index
    %c0_20 = arith.constant 0 : index
    %19 = vector.load %arg4[%c0_19, %c0_20] : memref<32x128xf32, #tpu.memory_space<vmem>>, vector<32x128xf32>
    tpu.vector_store %arg4[%c0_19, %c0_20], %18 {strides = array<i32>} : memref<32x128xf32, #tpu.memory_space<vmem>>, vector<32x128xf32>,
    return
  }
  func.func @transform_0(%arg0: i32) -> (i32, i32, i32) {
    %c0_i32 = arith.constant 0 : i32
    %c0_i32_0 = arith.constant 0 : i32
    %c0_i32_1 = arith.constant 0 : i32
    return %arg0, %c0_i32, %c0_i32_0 : i32, i32, i32
  }
  func.func @transform_1(%arg0: i32) -> (i32, i32) {
    %c0_i32 = arith.constant 0 : i32
    %c0_i32_0 = arith.constant 0 : i32
    %c0_i32_1 = arith.constant 0 : i32
    return %c0_i32, %c0_i32_0 : i32, i32
  }
  func.func @transform_2(%arg0: i32) -> (i32, i32) {
    %c0_i32 = arith.constant 0 : i32
    %c0_i32_0 = arith.constant 0 : i32
    %c0_i32_1 = arith.constant 0 : i32
    return %c0_i32, %c0_i32_0 : i32, i32
  }
  func.func @transform_3(%arg0: i32) -> (i32, i32) {
    %c0_i32 = arith.constant 0 : i32
    %c0_i32_0 = arith.constant 0 : i32
    return %arg0, %c0_i32 : i32, i32
  }
}

</mosaic_0001>

<bundles_post_ra>
// kernel: tpu_custom_call.1
= control target key start
LH: loop header
LB: loop body
LE: loop exit
PB: predicated region body
PF: predicated region fallthrough
CT: control target
= control target key end

     0   :  { %8 = vsyncpa [#allocation4], 0  ;;  %s675_s0 = inlined_call_operand.hbm [shape: f32[2,16,128], index: 0, kind: input, shape index: {}]   ;;  %s676_s1 = inlined_call_operand.hbm [shape: f32[384,128], index: 1, kind: input, shape index: {}]   ;;  %s677_s2 = inlined_call_operand.vmem [shape: f32[1,128], index: 2, kind: input, shape index: {}]   ;;  %s678_s3 = inlined_call_operand.hbm [shape: f32[32,128], index: 3, kind: output, shape index: {}]  }
   0x1   :  { %9 = vsyncpa [#allocation7], 0 }
   0x2   :  { %10 = vsyncpa [#allocation5], 0  ;;  %s593_s12 = smov [#allocation3]   ;;  %s521_s16 = scalar_lea.hbm %s675_s0, 512 }
   0x3   :  { %s16_s13 = sshll.u32 %s593_s12, 4  ;;  %p522_p0 = scmp.ne.s32.totalorder %s675_s0, %s521_s16  ;;  %s17_s13 = int_to_ptr.vmem [resolvable:$true] %s16_s13 }
   0x4   :  { %p525_p1 = scmp.lt.u32.totalorder %s521_s16, %s675_s0 }
   0x6   :  { %p527_p2 = pnand %p525_p1, %p522_p0 }
   0x8   :  { %530 = shalt.err (!%p527_p2)
}
   0x9   :  { %s531_s21 = scalar_lea.vmem %s17_s13, 512  ;;  %p536_p4 = scmp.lt.s32.totalorder %s17_s13, %s17_s13 }
   0xa   :  { %p532_p3 = scmp.ne.s32.totalorder %s17_s13, %s531_s21  ;;  %p537_p5 = scmp.lt.s32.totalorder %s531_s21, %s531_s21 }
   0xc   :  { %p538_p6 = por %p537_p5, %p536_p4 }
   0xe   :  { %p539_p7 = pnand %p538_p6, %p532_p3 }
  0x10   :  { %542 = shalt.err (!%p539_p7)
}
  0x11   :  { %s594_s22 = smov 128   ;;  %s595_s23 = smov 8  }
  0x12   :  { %22 = dma.hbm_to_vmem [thread:$0]  %s675_s0, 512, %s17_s13, [#allocation4], %s594_s22, %s594_s22, %s595_s23  }
  0x13   :  { %s596_s26 = smov [#allocation6]   ;;  %s543_s30 = scalar_lea.hbm %s676_s1, 6144 }
  0x14   :  { %s28_s27 = sshll.u32 %s596_s26, 4  ;;  %p544_p8 = scmp.ne.s32.totalorder %s676_s1, %s543_s30  ;;  %s29_s27 = int_to_ptr.vmem [resolvable:$true] %s28_s27 }
  0x15   :  { %p547_p9 = scmp.lt.u32.totalorder %s543_s30, %s676_s1 }
  0x17   :  { %p549_p10 = pnand %p547_p9, %p544_p8 }
  0x19   :  { %552 = shalt.err (!%p549_p10)
}
  0x1a   :  { %s553_s8 = scalar_lea.vmem %s29_s27, 6144  ;;  %p558_p12 = scmp.lt.s32.totalorder %s29_s27, %s29_s27 }
  0x1b   :  { %p554_p11 = scmp.ne.s32.totalorder %s29_s27, %s553_s8  ;;  %p559_p13 = scmp.lt.s32.totalorder %s553_s8, %s553_s8 }
  0x1d   :  { %p560_p0 = por %p559_p13, %p558_p12 }
  0x1f   :  { %p561_p1 = pnand %p560_p0, %p554_p11 }
  0x21   :  { %564 = shalt.err (!%p561_p1)
}
  0x22   :  { %34 = dma.hbm_to_vmem [thread:$0]  %s676_s1, 6144, %s29_s27, [#allocation7], %s594_s22, %s594_s22, %s595_s23  }
  0x23   :  { %587 = dma.done.wait [#allocation4], 512  }
  0x24   :  { %588 = vsyncadd [#allocation4], 4294966784 }
  0x25   :  { %589 = dma.done.wait [#allocation7], 6144  }
  0x26   :  { %590 = vsyncadd [#allocation7], 4294961152  ;;  %v597_v0 = vmov 0.0   ;;  %v113_v1 = vld [vmem:[#allocation6 + $0x80] sm:$0xff]  ;;  %v114_v2 = vld [vmem:[#allocation6 + $0x88] sm:$0xff]  ;;  %vm67_vm0 = vcmask 1046528  }
  0x27   :  { %43 = vst [vmem:[#allocation2] sm:$0x1] %v597_v0  ;;  %44 = vst [vmem:[#allocation2 + $0x18] sm:$0x1] %v597_v0  ;;  %v97_v3 = vld [vmem:[#allocation6] sm:$0xff]  ;;  %v451_v4 = vpack.c.bf16 %v114_v2, %v113_v1  ;;  %v98_v5 = vld [vmem:[#allocation6 + $0x8] sm:$0xff] }
  0x28   :  { %45 = vst [vmem:[#allocation2 + $0x11] sm:$0x1] %v597_v0  ;;  %46 = vst [vmem:[#allocation2 + $0x29] sm:$0x1] %v597_v0  ;;  %v115_v6 = vld [vmem:[#allocation6 + $0x90] sm:$0xff]  ;;  %v116_v7 = vld [vmem:[#allocation6 + $0x98] sm:$0xff]  ;;  %v453_v8 = vpack.c.bf16 %v98_v5, %v97_v3 }
  0x29   :  { %v455_v9 = vpack.c.bf16 %v116_v7, %v115_v6  ;;  %v129_v10 = vld [vmem:[#allocation6 + $0x100] sm:$0xff]  ;;  %v130_v11 = vld [vmem:[#allocation6 + $0x108] sm:$0xff]  ;;  %v99_v12 = vld [vmem:[#allocation6 + $0x10] sm:$0xff]  ;;  %452 = vmatprep.subr.bf16.mxu0 %v451_v4  ;;  %vm82_vm1 = vcmask 1045504  }
  0x2a   :  { %v483_v13 = vpack.c.bf16 %v130_v11, %v129_v10  ;;  %v100_v14 = vld [vmem:[#allocation6 + $0x18] sm:$0xff]  ;;  %v117_v15 = vld [vmem:[#allocation6 + $0xa0] sm:$0xff]  ;;  %v118_v16 = vld [vmem:[#allocation6 + $0xa8] sm:$0xff]  ;;  %454 = vmatpush3.bf16.msra.mxu0 %v453_v8 }
  0x2b   :  { %v457_v17 = vpack.c.bf16 %v100_v14, %v99_v12  ;;  %v131_v18 = vld [vmem:[#allocation6 + $0x110] sm:$0xff]  ;;  %v132_v19 = vld [vmem:[#allocation6 + $0x118] sm:$0xff]  ;;  %456 = vmatprep.subr.bf16.mxu0 %v455_v9  ;;  %v459_v20 = vpack.c.bf16 %v118_v16, %v117_v15  ;;  %v101_v22 = vld [vmem:[#allocation6 + $0x20] sm:$0xff] }
  0x2c   :  { %484 = vmatprep.subr.bf16.mxu1 %v483_v13  ;;  %v487_v21 = vpack.c.bf16 %v132_v19, %v131_v18  ;;  %v102_v23 = vld [vmem:[#allocation6 + $0x28] sm:$0xff]  ;;  %v119_v24 = vld [vmem:[#allocation6 + $0xb0] sm:$0xff]  ;;  %v120_v25 = vld [vmem:[#allocation6 + $0xb8] sm:$0xff] }
  0x2d   :  { %486 = vmatpush3.bf16.msra.mxu1 %v483_v13  ;;  %v133_v26 = vld [vmem:[#allocation6 + $0x120] sm:$0xff]  ;;  %v134_v27 = vld [vmem:[#allocation6 + $0x128] sm:$0xff]  ;;  %v461_v29 = vpack.c.bf16 %v102_v23, %v101_v22  ;;  %v135_v30 = vld [vmem:[#allocation6 + $0x130] sm:$0xff]  ;;  %v463_v32 = vpack.c.bf16 %v120_v25, %v119_v24 }
  0x2e   :  { %488 = vmatprep.subr.bf16.mxu1 %v487_v21  ;;  %v491_v28 = vpack.c.bf16 %v134_v27, %v133_v26  ;;  %458 = vmatpush3.bf16.msra.mxu0 %v457_v17  ;;  %v136_v31 = vld [vmem:[#allocation6 + $0x138] sm:$0xff]  ;;  %v103_v33 = vld [vmem:[#allocation6 + $0x30] sm:$0xff]  ;;  %v121_v35 = vld [vmem:[#allocation6 + $0xc0] sm:$0xff] }
  0x2f   :  { %460 = vmatprep.subr.bf16.mxu0 %v459_v20  ;;  %v104_v34 = vld [vmem:[#allocation6 + $0x38] sm:$0xff]  ;;  %v122_v36 = vld [vmem:[#allocation6 + $0xc8] sm:$0xff]  ;;  %v495_v37 = vpack.c.bf16 %v136_v31, %v135_v30  ;;  %v137_v39 = vld [vmem:[#allocation6 + $0x140] sm:$0xff] }
  0x30   :  { %v465_v38 = vpack.c.bf16 %v104_v34, %v103_v33  ;;  %v138_v40 = vld [vmem:[#allocation6 + $0x148] sm:$0xff]  ;;  %v467_v41 = vpack.c.bf16 %v122_v36, %v121_v35  ;;  %v105_v42 = vld [vmem:[#allocation6 + $0x40] sm:$0xff]  ;;  %v123_v44 = vld [vmem:[#allocation6 + $0xd0] sm:$0xff] }
  0x31   :  { %490 = vmatpush3.bf16.msra.mxu1 %v487_v21  ;;  %v106_v43 = vld [vmem:[#allocation6 + $0x48] sm:$0xff]  ;;  %v124_v45 = vld [vmem:[#allocation6 + $0xd8] sm:$0xff]  ;;  %v499_v46 = vpack.c.bf16 %v138_v40, %v137_v39  ;;  %v47_v47 = vld [vmem:[#allocation3] sm:$0xff] }
  0x32   :  { %492 = vmatprep.subr.bf16.mxu1 %v491_v28  ;;  %462 = vmatpush3.bf16.msra.mxu0 %v461_v29  ;;  %v48_v48 = vld [vmem:[#allocation3 + $0x8] sm:$0xff]  ;;  %v469_v49 = vpack.c.bf16 %v106_v43, %v105_v42  ;;  %v139_v50 = vld [vmem:[#allocation6 + $0x150] sm:$0xff]  ;;  %v140_v51 = vld [vmem:[#allocation6 + $0x158] sm:$0xff]  ;;  %51 = vst [vmem:[#allocation2 + $0x1] sm:$0xff] %v47_v47  ;;  %v471_v53 = vpack.c.bf16 %v124_v45, %v123_v44 }
  0x33   :  { %464 = vmatprep.subr.bf16.mxu0 %v463_v32  ;;  %52 = vst [vmem:[#allocation2 + $0x9] sm:$0xff] %v48_v48  ;;  %v49_v52 = vld [vmem:[#allocation3 + $0x10] sm:$0xff]  ;;  %v108_v55 = vld [vmem:[#allocation6 + $0x58] sm:$0xff]  ;;  %v125_v57 = vld [vmem:[#allocation6 + $0xe0] sm:$0xff]  ;;  %v503_v59 = vpack.c.bf16 %v140_v51, %v139_v50 }
  0x34   :  { %v107_v54 = vld [vmem:[#allocation6 + $0x50] sm:$0xff]  ;;  %v50_v56 = vld [vmem:[#allocation3 + $0x18] sm:$0xff]  ;;  %53 = vst [vmem:[#allocation2 + $0x19] sm:$0xff] %v49_v52  ;;  %v126_v58 = vld [vmem:[#allocation6 + $0xe8] sm:$0xff] }
  0x35   :  { %494 = vmatpush3.bf16.msra.mxu1 %v491_v28  ;;  %54 = vst [vmem:[#allocation2 + $0x21] sm:$0xff] %v50_v56  ;;  %v473_v60 = vpack.c.bf16 %v108_v55, %v107_v54  ;;  %v141_v61 = vld [vmem:[#allocation6 + $0x160] sm:$0xff]  ;;  %v142_v62 = vld [vmem:[#allocation6 + $0x168] sm:$0xff]  ;;  %v475_v63 = vpack.c.bf16 %v126_v58, %v125_v57  ;;  %v127_v2 = vld [vmem:[#allocation6 + $0xf0] sm:$0xff] }
  0x36   :  { %496 = vmatprep.subr.bf16.mxu1 %v495_v37  ;;  %466 = vmatpush3.bf16.msra.mxu0 %v465_v38  ;;  %v109_v0 = vld [vmem:[#allocation6 + $0x60] sm:$0xff]  ;;  %v110_v1 = vld [vmem:[#allocation6 + $0x68] sm:$0xff]  ;;  %v128_v3 = vld [vmem:[#allocation6 + $0xf8] sm:$0xff]  ;;  %v507_v4 = vpack.c.bf16 %v142_v62, %v141_v61 }
  0x37   :  { %468 = vmatprep.subr.bf16.mxu0 %v467_v41  ;;  %v477_v7 = vpack.c.bf16 %v110_v1, %v109_v0  ;;  %v143_v10 = vld [vmem:[#allocation6 + $0x170] sm:$0xff]  ;;  %v144_v11 = vld [vmem:[#allocation6 + $0x178] sm:$0xff]  ;;  %v479_v13 = vpack.c.bf16 %v128_v3, %v127_v2 }
  0x38   :  { %v111_v14 = vld [vmem:[#allocation6 + $0x70] sm:$0xff]  ;;  %v112_v15 = vld [vmem:[#allocation6 + $0x78] sm:$0xff]  ;;  %v511_v19 = vpack.c.bf16 %v144_v11, %v143_v10 }
  0x39   :  { %498 = vmatpush3.bf16.msra.mxu1 %v495_v37  ;;  %v55_v5 = vld [vmem:[#allocation2] sm:$0xff]  ;;  %v481_v21 = vpack.c.bf16 %v112_v15, %v111_v14 }
  0x3a   :  { %500 = vmatprep.subr.bf16.mxu1 %v499_v46  ;;  %470 = vmatpush3.bf16.msra.mxu0 %v469_v49  ;;  %v56_v6 = vld [vmem:[#allocation2 + $0x8] sm:$0xff]  ;;  %v68_v8 = vrot.slane %v55_v5, 1  ;;  %v83_v12 = vrot.slane %v55_v5, 2  ;;  %v57_v18 = vld [vmem:[#allocation2 + $0x10] sm:$0x3] }
  0x3b   :  { %472 = vmatprep.subr.bf16.mxu0 %v471_v53  ;;  %v69_v9 = vrot.slane %v56_v6, 1  ;;  %v84_v16 = vrot.slane %v56_v6, 2  ;;  %v71_v22 = vrot.slane %v57_v18, 1  ;;  %v86_v23 = vrot.slane %v57_v18, 2  ;;  %v58_v24 = vld [vmem:[#allocation2 + $0x18] sm:$0xff] }
  0x3c   :  { %v59_v25 = vld [vmem:[#allocation2 + $0x20] sm:$0xff]  ;;  %v60_v26 = vld [vmem:[#allocation2 + $0x28] sm:$0x3]  ;;  %v88_v27 = vrot.slane %v58_v24, 2  ;;  %v73_v30 = vrot.slane %v58_v24, 1 }
  0x3d   :  { %502 = vmatpush3.bf16.msra.mxu1 %v499_v46  ;;  %v70_v17 = vsel %vm67_vm0, %v68_v8, %v69_v9  ;;  %v85_v20 = vsel %vm82_vm1, %v83_v12, %v84_v16  ;;  %v89_v28 = vrot.slane %v59_v25, 2  ;;  %v72_v29 = vsel %vm67_vm0, %v69_v9, %v71_v22  ;;  %v348_v41 = vld [vmem:[%s677_s2] ss:$0 sm:$0xff]  ;;  %s598_s2 = smov [#allocation8]  }
  0x3e   :  { %504 = vmatprep.subr.bf16.mxu1 %v503_v59  ;;  %474 = vmatpush3.bf16.msra.mxu0 %v473_v60  ;;  %v74_v31 = vrot.slane %v59_v25, 1  ;;  %v87_v32 = vsel %vm82_vm1, %v84_v16, %v86_v23  ;;  %v91_v33 = vrot.slane %v60_v26, 2  ;;  %v76_v36 = vrot.slane %v60_v26, 1  ;;  %s335_s11 = sshll.u32 %s598_s2, 4  ;;  %s336_s11 = int_to_ptr.vmem [resolvable:$true] %s335_s11 }
  0x3f   :  { %476 = vmatprep.subr.bf16.mxu0 %v475_v63  ;;  %216 = vmatprep.mubr.f32.mxu0 %v70_v17  ;;  %v90_v34 = vsel %vm82_vm1, %v88_v27, %v89_v28  ;;  %s565_s12 = scalar_lea.vmem %s336_s11, 512  ;;  %p570_p3 = scmp.lt.s32.totalorder %s336_s11, %s336_s11 }
  0x40   :  { %445 = vmatprep.mubr.f32.mxu1 %v85_v20  ;;  %v75_v35 = vsel %vm67_vm0, %v73_v30, %v74_v31  ;;  %v92_v37 = vsel %vm82_vm1, %v89_v28, %v91_v33  ;;  %v77_v38 = vsel %vm67_vm0, %v74_v31, %v76_v36  ;;  %p566_p2 = scmp.ne.s32.totalorder %s336_s11, %s565_s12  ;;  %p571_p4 = scmp.lt.s32.totalorder %s565_s12, %s565_s12 }
  0x41   :  { %506 = vmatpush3.bf16.msra.mxu1 %v503_v59 }
  0x42   :  { %508 = vmatprep.subr.bf16.mxu1 %v507_v4  ;;  %478 = vmatpush3.bf16.msra.mxu0 %v477_v7  ;;  %p572_p5 = por %p571_p4, %p570_p3 }
  0x43   :  { %480 = vmatprep.subr.bf16.mxu0 %v479_v13 }
  0x44   :  { %p573_p6 = pnand %p572_p5, %p566_p2 }
  0x45   :  { %510 = vmatpush3.bf16.msra.mxu1 %v507_v4 }
  0x46   :  { %512 = vmatprep.subr.bf16.mxu1 %v511_v19  ;;  %482 = vmatpush3.bf16.msra.mxu0 %v481_v21 }
  0x49   :  { %514 = vmatpush3.bf16.msra.mxu1 %v511_v19  ;;  %217 = vmatmul.mubr.f32.vlgmr.msra.gmra.mrb[0].mxu0 %v55_v5 }
  0x4a   :  { %221 = vmatprep.mubr.f32.mxu0 %v72_v29 }
  0x4c   :  { %446 = vmatmul.mubr.f32.vlgmr.msra.gmra.mrb[0].mxu1 %v87_v32 }
  0x4d   :  { %448 = vmatprep.mubr.f32.mxu1 %v90_v34  ;;  %222 = vmatmul.mubr.f32.gmra.mrb[2].mxu0 %v56_v6 }
  0x4e   :  { %226 = vmatprep.mubr.f32.mxu0 %v75_v35 }
  0x50   :  { %449 = vmatmul.mubr.f32.gmra.mrb[2].mxu1 %v92_v37 }
  0x51   :  { %227 = vmatmul.mubr.f32.gmra.mrb[4].mxu0 %v58_v24 }
  0x52   :  { %231 = vmatprep.mubr.f32.mxu0 %v77_v38 }
  0x55   :  { %232 = vmatmul.mubr.f32.gmra.mrb[6].mxu0 %v59_v25 }
 0x11c   :  { %v381_v39 = vpop.f32.mrb[0].mxu0 }
 0x11d   :  { %v382_v40 = vpop.f32.mrb[1].mxu0 }
 0x11e   :  { %v383_v42 = vadd.f32 %v382_v40, %v381_v39 }
 0x11f   :  { %v447_v43 = vpop.f32.mrb[0].mxu1 }
 0x120   :  { %v303_v44 = vpop.f32.mrb[1].mxu1  ;;  %v384_v45 = vpop.f32.mrb[2].mxu0  ;;  %v219_v46 = vadd.f32 %v383_v42, %v348_v41 }
 0x121   :  { %v385_v47 = vpop.f32.mrb[3].mxu0 }
 0x122   :  { %v386_v48 = vadd.f32 %v385_v47, %v384_v45  ;;  %v304_v49 = vadd.f32 %v303_v44, %v219_v46 }
 0x123   :  { %v450_v50 = vpop.f32.mrb[2].mxu1 }
 0x124   :  { %v313_v51 = vpop.f32.mrb[3].mxu1  ;;  %v224_v52 = vadd.f32 %v386_v48, %v348_v41  ;;  %v322_v53 = vmax.f32 %v304_v49, 0.0  ;;  %v387_v54 = vpop.f32.mrb[4].mxu0 }
 0x125   :  { %v388_v55 = vpop.f32.mrb[5].mxu0 }
 0x126   :  { %v309_v56 = vadd.f32 %v447_v43, %v224_v52  ;;  %326 = vst [vmem:[#allocation8] sm:$0xff] %v322_v53  ;;  %v389_v57 = vadd.f32 %v388_v55, %v387_v54 }
 0x128   :  { %v323_v58 = vmax.f32 %v309_v56, 0.0  ;;  %v390_v59 = vpop.f32.mrb[6].mxu0  ;;  %v229_v60 = vadd.f32 %v389_v57, %v348_v41 }
 0x129   :  { %v391_v61 = vpop.f32.mrb[7].mxu0 }
 0x12a   :  { %327 = vst [vmem:[#allocation8 + $0x8] sm:$0xff] %v323_v58  ;;  %v392_v62 = vadd.f32 %v391_v61, %v390_v59  ;;  %v314_v63 = vadd.f32 %v313_v51, %v229_v60 }
 0x12c   :  { %v234_v0 = vadd.f32 %v392_v62, %v348_v41  ;;  %v324_v1 = vmax.f32 %v314_v63, 0.0 }
 0x12e   :  { %v319_v2 = vadd.f32 %v450_v50, %v234_v0  ;;  %328 = vst [vmem:[#allocation8 + $0x10] sm:$0xff] %v324_v1 }
 0x130   :  { %v325_v3 = vmax.f32 %v319_v2, 0.0 }
 0x132   :  { %329 = vst [vmem:[#allocation8 + $0x18] sm:$0xff] %v325_v3 }
 0x133   :  { %576 = shalt.err (!%p573_p6)
}
 0x134   :  { %s577_s15 = scalar_lea.hbm %s678_s3, 512 }
 0x135   :  { %p578_p7 = scmp.ne.s32.totalorder %s678_s3, %s577_s15  ;;  %p581_p8 = scmp.lt.u32.totalorder %s577_s15, %s678_s3 }
 0x137   :  { %p583_p9 = pnand %p581_p8, %p578_p7 }
 0x139   :  { %586 = shalt.err (!%p583_p9)
}
 0x13a   :  { %341 = dma.vmem_to_hbm [thread:$0]  %s336_s11, 512, %s678_s3, [#allocation5], %s594_s22, %s594_s22, %s595_s23  }
 0x13b   :  { %591 = dma.done.wait [#allocation5], 512  }
 0x13c   :  { %592 = vsyncadd [#allocation5], 4294966784 }
 0x13d   :  { %345 = vsyncpa [#allocation4], 1 }
 0x13e   :  { %346 = vsyncpa [#allocation7], 1 }
 0x13f   :  { %347 = vsyncpa [#allocation5], 1 }

</bundles_post_ra>
